<compile_context>
chip_gen: v7x
topology: tpu7x:2x2x1
jax: 0.10.0
libtpu: 0.0.40
codegen_flags: <defaults>
</compile_context>

<pallas_src>
import jax
import jax.numpy as jnp
from jax.experimental import pallas as pl
from jax.experimental.pallas import tpu as pltpu


def _attention_kernel(lens_ref, q_ref, k_ref, v_ref, out_ref, attn_ref):
    # Block shapes: lens (BN,1,1) int32, q (BN,1,H), k (BN,T,H), v (BN,T,Hv),
    #               out (BN,1,Hv) f32, attn (BN,1,T) f32.
    q = q_ref[...].astype(jnp.float32)
    k = k_ref[...].astype(jnp.float32)
    v = v_ref[...].astype(jnp.float32)
    lens = lens_ref[...]                                    # (BN,1,1) int32

    # energy[b,0,t] = sum_h q[b,0,h] * k[b,t,h]  -- batched MXU matmul.
    energy = jax.lax.dot_general(
        q, k, (((2,), (2,)), ((0,), (0,))),
        preferred_element_type=jnp.float32)                 # (BN,1,T)

    # Length mask (exactly like the reference masked_fill_).
    t_idx = jax.lax.broadcasted_iota(jnp.int32, energy.shape, 2)
    energy = jnp.where(t_idx >= lens, jnp.float32(-1000000000.0), energy)

    # Softmax over T (lane axis).
    m = jnp.max(energy, axis=-1, keepdims=True)
    e = jnp.exp(energy - m)
    s = jnp.sum(e, axis=-1, keepdims=True)
    attn = e * pl.reciprocal(s, approx=False)               # (BN,1,T)

    # context[b,0,hv] = sum_t attn[b,0,t] * v[b,t,hv]  -- batched MXU matmul.
    out = jax.lax.dot_general(
        attn, v, (((2,), (1,)), ((0,), (0,))),
        preferred_element_type=jnp.float32)                 # (BN,1,Hv)

    out_ref[...] = out.astype(out_ref.dtype)
    attn_ref[...] = attn.astype(attn_ref.dtype)


def _round_up(x, m):
    return (x + m - 1) // m * m


def _vmem_budget():
    """Generation-aware (vmem_limit_bytes, per-block-row budget) in bytes."""
    try:
        cap = int(pltpu.get_tpu_info().vmem_capacity_bytes)
    except Exception:  # query unavailable -> assume the smallest VMEM (v7x)
        cap = 64 * 1024 * 1024
    if cap <= 64 * 1024 * 1024:                 # v7x: 64 MiB per TensorCore
        return 48 * 1024 * 1024, 16 * 1024 * 1024
    return 96 * 1024 * 1024, 40 * 1024 * 1024   # v5e / v6e: 128 MiB


def _bytes_per_batch_row(T, H, Hv, kv_itemsize, q_itemsize):
    """VMEM bytes one batch row costs, lane(128)/sublane(8)-padding aware."""
    Ts = _round_up(T, 8)
    Hl, Hvl, Tl = _round_up(H, 128), _round_up(Hv, 128), _round_up(T, 128)
    # Double-buffered pipeline blocks (inputs + outputs).
    io = 2 * (Ts * Hl * kv_itemsize            # key block
              + Ts * Hvl * kv_itemsize         # value block
              + 8 * Hl * q_itemsize            # query (1 row -> 8 sublanes)
              + 8 * 128 * 4                    # lens
              + 8 * Hvl * 4                    # context output
              + 8 * Tl * 4)                    # attention output
    # In-kernel f32 intermediates (K/V upcasts, energy / exp / attn temps).
    scratch = Ts * (Hl + Hvl) * 4 + 4 * 8 * Tl * 4
    return io + scratch


def attention(query, key, value, lens, *, max_block_n=256):
    """query: (N,H); key: (N,T,H); value: (N,T,Hv); lens: (N,) int.

    Returns (context (N,Hv) f32, attention (N,T) f32).  query/key/value may be
    f32 or bf16; all in-kernel math is f32.
    """
    N, T, H = key.shape
    Hv = value.shape[-1]
    assert query.shape == (N, H)
    assert value.shape[:2] == (N, T)

    vmem_limit, block_budget = _vmem_budget()
    row_bytes = _bytes_per_batch_row(
        T, H, Hv, jnp.dtype(key.dtype).itemsize, jnp.dtype(query.dtype).itemsize)
    bn = max(8, (block_budget // row_bytes) // 8 * 8)
    BN = min(max_block_n, bn)
    if N >= 16:
        # Keep >= 2 batch blocks so ("parallel",) can use both v7x TensorCores.
        BN = min(BN, _round_up(pl.cdiv(N, 2), 8))
    if BN >= N:
        BN = N           # single block covering the exact batch; no masking
    grid_n = pl.cdiv(N, BN)  # ragged last block handled by Pallas edge masking

    # Free metadata reshapes: q / lens get a singleton "M" dim so both matmuls
    # are canonical rank-3 batched dot_generals; K / V pass through untouched
    # (no padding, no extra HBM pass).
    q3 = query.reshape(N, 1, H)
    lens3 = lens.astype(jnp.int32).reshape(N, 1, 1)

    out3, attn3 = pl.pallas_call(
        _attention_kernel,
        grid=(grid_n,),
        in_specs=[
            pl.BlockSpec((BN, 1, 1), lambda b: (b, 0, 0)),     # lens
            pl.BlockSpec((BN, 1, H), lambda b: (b, 0, 0)),     # query
            pl.BlockSpec((BN, T, H), lambda b: (b, 0, 0)),     # key
            pl.BlockSpec((BN, T, Hv), lambda b: (b, 0, 0)),    # value
        ],
        out_specs=[
            pl.BlockSpec((BN, 1, Hv), lambda b: (b, 0, 0)),    # context
            pl.BlockSpec((BN, 1, T), lambda b: (b, 0, 0)),     # attention
        ],
        out_shape=(
            jax.ShapeDtypeStruct((N, 1, Hv), jnp.float32),
            jax.ShapeDtypeStruct((N, 1, T), jnp.float32),
        ),
        compiler_params=pltpu.CompilerParams(
            dimension_semantics=("parallel",),   # batch blocks over TCs (v7x)
            vmem_limit_bytes=vmem_limit,
        ),
    )(lens3, q3, key, value)

    return out3.reshape(N, Hv), attn3.reshape(N, T)


def _reference(query, key, value, lens):
    # Pure-JAX reference mirroring the PyTorch forward exactly (f32-accurate).
    energy = jnp.einsum("nth,nh->nt", key, query,
                        precision=jax.lax.Precision.HIGHEST)
    T = key.shape[1]
    mask = jnp.arange(T)[None, :] >= lens[:, None]
    energy = jnp.where(mask, -1000000000.0, energy)
    attn = jax.nn.softmax(energy, axis=1)
    out = jnp.einsum("nt,ntv->nv", attn, value,
                     precision=jax.lax.Precision.HIGHEST)
    return out, attn


if __name__ == "__main__":
    N, T, H, Hv = 2, 8, 32, 32
    k0, k1, k2 = jax.random.split(jax.random.PRNGKey(0), 3)
    query = jax.random.normal(k0, (N, H), dtype=jnp.float32)
    key = jax.random.normal(k1, (N, T, H), dtype=jnp.float32)
    value = jax.random.normal(k2, (N, T, Hv), dtype=jnp.float32)
    lens = jnp.array([T, 5], dtype=jnp.int32)

    out, attn = attention(query, key, value, lens)
    jax.block_until_ready((out, attn))

    ref_out, ref_attn = _reference(query, key, value, lens)
    assert out.shape == (N, Hv) and attn.shape == (N, T)
    assert jnp.allclose(out, ref_out, atol=1e-5, rtol=1e-5)
    assert jnp.allclose(attn, ref_attn, atol=1e-5, rtol=1e-5)

    print("KERNEL_OK")
</pallas_src>

<mosaic_0001>
module attributes {stable_mosaic.version = 11 : i64} {
  func.func @_attention_kernel(%arg0: i32, %arg1: memref<2x1x1xi32, #tpu.memory_space<vmem>>, %arg2: memref<2x1x32xf32, #tpu.memory_space<vmem>>, %arg3: memref<2x8x32xf32, #tpu.memory_space<vmem>>, %arg4: memref<2x8x32xf32, #tpu.memory_space<vmem>>, %arg5: memref<2x1x32xf32, #tpu.memory_space<vmem>>, %arg6: memref<2x1x8xf32, #tpu.memory_space<vmem>>) attributes {dimension_semantics = [#tpu.dimension_semantics<parallel>], iteration_bounds = array<i64: 1>, scalar_prefetch = 0 : i64, scratch_operands = 0 : i64, tpu.core_type = #tpu.core_type<tc>, window_params = [{transform_indices = @transform_0, window_bounds = array<i64: 2, 1, 1>}, {transform_indices = @transform_1, window_bounds = array<i64: 2, 1, 32>}, {transform_indices = @transform_2, window_bounds = array<i64: 2, 8, 32>}, {transform_indices = @transform_3, window_bounds = array<i64: 2, 8, 32>}, {transform_indices = @transform_4, window_bounds = array<i64: 2, 1, 32>}, {transform_indices = @transform_5, window_bounds = array<i64: 2, 1, 8>}]} {
    %c0 = arith.constant 0 : index
    %c0_0 = arith.constant 0 : index
    %c0_1 = arith.constant 0 : index
    %0 = vector.load %arg2[%c0, %c0_0, %c0_1] : memref<2x1x32xf32, #tpu.memory_space<vmem>>, vector<2x1x32xf32>
    %c0_2 = arith.constant 0 : index
    %c0_3 = arith.constant 0 : index
    %c0_4 = arith.constant 0 : index
    %1 = vector.load %arg3[%c0_2, %c0_3, %c0_4] : memref<2x8x32xf32, #tpu.memory_space<vmem>>, vector<2x8x32xf32>
    %c0_5 = arith.constant 0 : index
    %c0_6 = arith.constant 0 : index
    %c0_7 = arith.constant 0 : index
    %2 = vector.load %arg4[%c0_5, %c0_6, %c0_7] : memref<2x8x32xf32, #tpu.memory_space<vmem>>, vector<2x8x32xf32>
    %c0_8 = arith.constant 0 : index
    %c0_9 = arith.constant 0 : index
    %c0_10 = arith.constant 0 : index
    %3 = vector.load %arg1[%c0_8, %c0_9, %c0_10] : memref<2x1x1xi32, #tpu.memory_space<vmem>>, vector<2x1x1xi32>
    %cst = arith.constant dense<0.000000e+00> : vector<2x1x8xf32>
    %4 = tpu.matmul %0, %1, %cst {dimension_numbers = #tpu.dot_dimension_numbers<[2], [2], [1], [1], [0, 0, 0, 1, 1, 1], [0], [0]>} : vector<2x1x32xf32>, vector<2x8x32xf32>, vector<2x1x8xf32> -> vector<2x1x8xf32>
    %5 = tpu.iota {dimensions = array<i32: 2>} : vector<2x1x8xi32>
    %6 = vector.broadcast %3 : vector<2x1x1xi32> to vector<2x1x8xi32>
    %7 = arith.cmpi sge, %5, %6 : vector<2x1x8xi32>
    %cst_11 = arith.constant -1.000000e+09 : f32
    %8 = vector.broadcast %cst_11 : f32 to vector<2x1x8xf32>
    %9 = arith.select %7, %8, %4 : vector<2x1x8xi1>, vector<2x1x8xf32>
    %cst_12 = arith.constant dense<0xFF800000> : vector<2x1xf32>
    %10 = vector.multi_reduction <maximumf>, %9, %cst_12 [2] : vector<2x1x8xf32> to vector<2x1xf32>
    %11 = vector.shape_cast %10 : vector<2x1xf32> to vector<2x1x1xf32>
    %12 = vector.broadcast %11 : vector<2x1x1xf32> to vector<2x1x8xf32>
    %13 = arith.subf %9, %12 : vector<2x1x8xf32>
    %14 = math.exp %13 : vector<2x1x8xf32>
    %cst_13 = arith.constant dense<0.000000e+00> : vector<2x1xf32>
    %15 = vector.multi_reduction <add>, %14, %cst_13 [2] : vector<2x1x8xf32> to vector<2x1xf32>
    %16 = vector.shape_cast %15 : vector<2x1xf32> to vector<2x1x1xf32>
    %17 = tpu.reciprocal %16 : vector<2x1x1xf32> -> vector<2x1x1xf32>
    %18 = vector.broadcast %17 : vector<2x1x1xf32> to vector<2x1x8xf32>
    %19 = arith.mulf %14, %18 : vector<2x1x8xf32>
    %cst_14 = arith.constant dense<0.000000e+00> : vector<2x1x32xf32>
    %20 = tpu.matmul %19, %2, %cst_14 {dimension_numbers = #tpu.dot_dimension_numbers<[2], [1], [1], [2], [0, 0, 0, 1, 1, 2], [0], [0]>} : vector<2x1x8xf32>, vector<2x8x32xf32>, vector<2x1x32xf32> -> vector<2x1x32xf32>
    %c0_15 = arith.constant 0 : index
    %c0_16 = arith.constant 0 : index
    %c0_17 = arith.constant 0 : index
    %21 = vector.load %arg5[%c0_15, %c0_16, %c0_17] : memref<2x1x32xf32, #tpu.memory_space<vmem>>, vector<2x1x32xf32>
    tpu.vector_store %arg5[%c0_15, %c0_16, %c0_17], %20 {strides = array<i32>} : memref<2x1x32xf32, #tpu.memory_space<vmem>>, vector<2x1x32xf32>,
    %c0_18 = arith.constant 0 : index
    %c0_19 = arith.constant 0 : index
    %c0_20 = arith.constant 0 : index
    %22 = vector.load %arg6[%c0_18, %c0_19, %c0_20] : memref<2x1x8xf32, #tpu.memory_space<vmem>>, vector<2x1x8xf32>
    tpu.vector_store %arg6[%c0_18, %c0_19, %c0_20], %19 {strides = array<i32>} : memref<2x1x8xf32, #tpu.memory_space<vmem>>, vector<2x1x8xf32>,
    return
  }
  func.func @transform_0(%arg0: i32) -> (i32, i32, i32) {
    %c0_i32 = arith.constant 0 : i32
    %c0_i32_0 = arith.constant 0 : i32
    %c0_i32_1 = arith.constant 0 : i32
    return %arg0, %c0_i32, %c0_i32_0 : i32, i32, i32
  }
  func.func @transform_1(%arg0: i32) -> (i32, i32, i32) {
    %c0_i32 = arith.constant 0 : i32
    %c0_i32_0 = arith.constant 0 : i32
    %c0_i32_1 = arith.constant 0 : i32
    return %arg0, %c0_i32, %c0_i32_0 : i32, i32, i32
  }
  func.func @transform_2(%arg0: i32) -> (i32, i32, i32) {
    %c0_i32 = arith.constant 0 : i32
    %c0_i32_0 = arith.constant 0 : i32
    %c0_i32_1 = arith.constant 0 : i32
    return %arg0, %c0_i32, %c0_i32_0 : i32, i32, i32
  }
  func.func @transform_3(%arg0: i32) -> (i32, i32, i32) {
    %c0_i32 = arith.constant 0 : i32
    %c0_i32_0 = arith.constant 0 : i32
    %c0_i32_1 = arith.constant 0 : i32
    return %arg0, %c0_i32, %c0_i32_0 : i32, i32, i32
  }
  func.func @transform_4(%arg0: i32) -> (i32, i32, i32) {
    %c0_i32 = arith.constant 0 : i32
    %c0_i32_0 = arith.constant 0 : i32
    %c0_i32_1 = arith.constant 0 : i32
    return %arg0, %c0_i32, %c0_i32_0 : i32, i32, i32
  }
  func.func @transform_5(%arg0: i32) -> (i32, i32, i32) {
    %c0_i32 = arith.constant 0 : i32
    %c0_i32_0 = arith.constant 0 : i32
    %c0_i32_1 = arith.constant 0 : i32
    return %arg0, %c0_i32, %c0_i32_0 : i32, i32, i32
  }
}

</mosaic_0001>

<bundles_post_ra>
// kernel: tpu_custom_call.1
= control target key start
LH: loop header
LB: loop body
LE: loop exit
PB: predicated region body
PF: predicated region fallthrough
CT: control target
= control target key end

     0   :  { %11 = vsyncpa [#allocation3], 0  ;;  %s700_s0 = inlined_call_operand.vmem [shape: s32[2,1,1], index: 0, kind: input, shape index: {}]   ;;  %s701_s1 = inlined_call_operand.vmem [shape: f32[2,1,32], index: 1, kind: input, shape index: {}]   ;;  %s702_s2 = inlined_call_operand.hbm [shape: f32[2,8,32], index: 2, kind: input, shape index: {}]   ;;  %s703_s3 = inlined_call_operand.hbm [shape: f32[2,8,32], index: 3, kind: input, shape index: {}]   ;;  %s704_s4 = inlined_call_operand.hbm [shape: f32[2,1,32], index: 4, kind: output, shape index: {0}]   ;;  %s705_s5 = inlined_call_operand.hbm [shape: f32[2,1,8], index: 5, kind: output, shape index: {1}]  }
   0x1   :  { %12 = vsyncpa [#allocation6], 0 }
   0x2   :  { %13 = vsyncpa [#allocation4], 0 }
   0x3   :  { %14 = vsyncpa [#allocation9], 0  ;;  %s589_s18 = smov [#allocation2]   ;;  %s493_s22 = scalar_lea.hbm %s702_s2, 256 }
   0x4   :  { %s24_s19 = sshll.u32 %s589_s18, 4  ;;  %p494_p0 = scmp.ne.s32.totalorder %s702_s2, %s493_s22  ;;  %s25_s19 = int_to_ptr.vmem [resolvable:$true] %s24_s19 }
   0x5   :  { %p497_p1 = scmp.lt.u32.totalorder %s493_s22, %s702_s2 }
   0x7   :  { %p499_p2 = pnand %p497_p1, %p494_p0 }
   0x9   :  { %502 = shalt.err (!%p499_p2)
}
   0xa   :  { %s503_s27 = scalar_lea.vmem %s25_s19, 256  ;;  %p508_p4 = scmp.lt.s32.totalorder %s25_s19, %s25_s19 }
   0xb   :  { %p504_p3 = scmp.ne.s32.totalorder %s25_s19, %s503_s27  ;;  %p509_p5 = scmp.lt.s32.totalorder %s503_s27, %s503_s27 }
   0xd   :  { %p510_p6 = por %p509_p5, %p508_p4 }
   0xf   :  { %p511_p7 = pnand %p510_p6, %p504_p3 }
  0x11   :  { %514 = shalt.err (!%p511_p7)
}
  0x12   :  { %s590_s28 = smov 128   ;;  %s591_s29 = smov 8  }
  0x13   :  { %30 = dma.hbm_to_vmem [thread:$0]  %s702_s2, 256, %s25_s19, [#allocation3], %s590_s28, %s590_s28, %s591_s29  }
  0x14   :  { %s592_s7 = smov [#allocation5]   ;;  %s515_s11 = scalar_lea.hbm %s703_s3, 256 }
  0x15   :  { %s36_s8 = sshll.u32 %s592_s7, 4  ;;  %p516_p8 = scmp.ne.s32.totalorder %s703_s3, %s515_s11  ;;  %s37_s8 = int_to_ptr.vmem [resolvable:$true] %s36_s8 }
  0x16   :  { %p519_p9 = scmp.lt.u32.totalorder %s515_s11, %s703_s3 }
  0x18   :  { %p521_p10 = pnand %p519_p9, %p516_p8 }
  0x1a   :  { %524 = shalt.err (!%p521_p10)
}
  0x1b   :  { %s525_s16 = scalar_lea.vmem %s37_s8, 256  ;;  %p530_p12 = scmp.lt.s32.totalorder %s37_s8, %s37_s8 }
  0x1c   :  { %p526_p11 = scmp.ne.s32.totalorder %s37_s8, %s525_s16  ;;  %p531_p13 = scmp.lt.s32.totalorder %s525_s16, %s525_s16 }
  0x1e   :  { %p532_p0 = por %p531_p13, %p530_p12 }
  0x20   :  { %p533_p1 = pnand %p532_p0, %p526_p11 }
  0x22   :  { %536 = shalt.err (!%p533_p1)
}
  0x23   :  { %42 = dma.hbm_to_vmem [thread:$0]  %s703_s3, 256, %s37_s8, [#allocation6], %s590_s28, %s590_s28, %s591_s29  }
  0x24   :  { %581 = dma.done.wait [#allocation3], 256  }
  0x25   :  { %582 = vsyncadd [#allocation3], 4294967040 }
  0x26   :  { %583 = dma.done.wait [#allocation6], 256  }
  0x27   :  { %584 = vsyncadd [#allocation6], 4294967040  ;;  %v593_v0 = vmov 0.0   ;;  %vm594_vm0 = vmmov 0   ;;  %v595_v1 = vmov 0   ;;  %vm57_vm1 = vcmask 261120  }
  0x28   :  { %453 = vmatprep.subr.mxu0 %v593_v0  ;;  %458 = vmatprep.subr.mxu1 %v593_v0  ;;  %v51_v2 = vld [vmem:[#allocation2] sm:$0xff]  ;;  %v52_v3 = vld [vmem:[#allocation2 + $0x8] sm:$0xff]  ;;  %v49_v4 = vld [vmem:[%s701_s1] sm:$0x1]  ;;  %v210_v8 = vlaneseq  ;;  %vm230_vm3 = vcmask 57344   ;;  %vm253_vm5 = vcmask 64512  }
  0x29   :  { %455 = vmatprep.mubr.msk.f32.mxu0 %vm594_vm0, %v593_v0  ;;  %460 = vmatprep.mubr.msk.f32.mxu1 %vm594_vm0, %v593_v0  ;;  %v50_v5 = vld [vmem:[%s701_s1 + $0x1] sm:$0x1]  ;;  %v55_v6 = vld [vmem:[%s700_s0] sm:$0x1]  ;;  %v54_v35 = vld [vmem:[#allocation5 + $0x8] sm:$0xff] }
  0x2a   :  { %484 = vset.pattern.permute.xlu0 %v595_v1  ;;  %454 = vmatpush3.xpose.msk.msra.mxu0 %vm57_vm1, %v51_v2  ;;  %v56_v7 = vld [vmem:[%s700_s0 + $0x1] sm:$0x1]  ;;  %v216_v9 = vshrl.u32 %v210_v8, 7  ;;  %v211_v14 = vand.u32 127, %v210_v8  ;;  %s596_s0 = smov [#allocation8]  }
  0x2b   :  { %459 = vmatpush3.xpose.msk.msra.mxu1 %vm57_vm1, %v52_v3  ;;  %213 = vperm.xlu0 %484, %v55_v6   ;;  %v53_v34 = vld [vmem:[#allocation5] sm:$0xff]  ;;  %s422_s1 = sshll.u32 %s596_s0, 4  ;;  %s423_s1 = int_to_ptr.vmem [resolvable:$true] %s422_s1 }
  0x2c   :  { %463 = vmatprep.subr.mxu0 %v593_v0  ;;  %468 = vmatprep.subr.mxu1 %v593_v0  ;;  %v217_v11 = vsub.s32 0, %v216_v9  ;;  %s537_s25 = scalar_lea.vmem %s423_s1, 32  ;;  %p542_p3 = scmp.lt.s32.totalorder %s423_s1, %s423_s1 }
  0x2d   :  { %456 = vmatmul.mubr.msk.f32.vlgmr.msra.gmra.mrb[0].mxu0 %vm57_vm1, %v49_v4  ;;  %p538_p2 = scmp.ne.s32.totalorder %s423_s1, %s537_s25  ;;  %p543_p4 = scmp.lt.s32.totalorder %s537_s25, %s537_s25 }
  0x2e   :  { %461 = vmatmul.mubr.msk.f32.vlgmr.msra.gmra.mrb[0].mxu1 %vm57_vm1, %v50_v5  ;;  %465 = vmatprep.mubr.msk.f32.mxu0 %vm594_vm0, %v593_v0 }
  0x2f   :  { %470 = vmatprep.mubr.msk.f32.mxu1 %vm594_vm0, %v593_v0  ;;  %220 = vperm.xlu0 %484, %v56_v7   ;;  %p544_p5 = por %p543_p4, %p542_p3 }
  0x30   :  { %464 = vmatpush3.msra.mxu0 %v53_v34  ;;  %469 = vmatpush3.msra.mxu1 %v54_v35 }
  0x31   :  { %p545_p6 = pnand %p544_p5, %p538_p2 }
  0xaa   :  { %v214_v10 = vpop.permute.xlu0 %213 }
  0xab   :  { %v218_v13 = vrot.slane %v214_v10, %v217_v11 }
  0xad   :  { %vm226_vm2 = vcmp.ge.s32.totalorder %v211_v14, %v218_v13 }
  0xae   :  { %v221_v12 = vpop.permute.xlu0 %220 }
  0xaf   :  { %v225_v15 = vrot.slane %v221_v12, %v217_v11 }
  0xb1   :  { %vm227_vm4 = vcmp.ge.s32.totalorder %v211_v14, %v225_v15 }
 0x100   :  { %v130_v16 = vpop.f32.mrb[0].mxu0 }
 0x101   :  { %v206_v17 = vpop.f32.mrb[0].mxu1  ;;  %v228_v18 = vsel %vm226_vm2, -1e+09, %v130_v16  ;;  %v457_v19 = vpop.f32.mrb[1].mxu0 }
 0x102   :  { %v462_v20 = vpop.f32.mrb[1].mxu1  ;;  %v231_v21 = vsel %vm230_vm3, %v228_v18, -inf  ;;  %v229_v22 = vsel %vm227_vm4, -1e+09, %v206_v17 }
 0x103   :  { %232 = vmax.xlane.f32.xlu1 %v231_v21  ;;  %v234_v23 = vsel %vm230_vm3, %v229_v22, -inf }
 0x107   :  { %235 = vmax.xlane.f32.xlu1 %v234_v23 }
 0x190   :  { %v233_v24 = vpop.xlane.xlu1 %232 }
 0x191   :  { %v237_v25 = vsub.f32 %v228_v18, %v233_v24 }
 0x193   :  { %v239_v26 = vmul.f32 1.442695, %v237_v25 }
 0x194   :  { %v236_v27 = vpop.xlane.xlu1 %235 }
 0x195   :  { %485 = vpow2.f32 %v239_v26  ;;  %v238_v28 = vsub.f32 %v229_v22, %v236_v27 }
 0x197   :  { %v241_v29 = vmul.f32 1.442695, %v238_v28 }
 0x199   :  { %487 = vpow2.f32 %v241_v29 }
 0x19f   :  { %v486_v30 = vpop.eup %485 }
 0x1a0   :  { %v243_v31 = vsel %vm230_vm3, %v486_v30, 0.0 }
 0x1a1   :  { %244 = vadd.xlane.f32.xlu0 %v243_v31 }
 0x1a3   :  { %v488_v32 = vpop.eup %487 }
 0x1a4   :  { %v246_v33 = vsel %vm230_vm3, %v488_v32, 0.0 }
 0x1a5   :  { %247 = vadd.xlane.f32.xlu1 %v246_v33 }
 0x22e   :  { %v245_v36 = vpop.xlane.xlu0 %244 }
 0x22f   :  { %489 = vrcp.f32 %v245_v36 }
 0x232   :  { %v248_v37 = vpop.xlane.xlu1 %247 }
 0x233   :  { %491 = vrcp.f32 %v248_v37 }
 0x239   :  { %v490_v38 = vpop.eup %489 }
 0x23a   :  { %v251_v39 = vmul.f32 %v490_v38, %v486_v30 }
 0x23c   :  { %403 = vst.msk [vmem:[#allocation8] sm:$0x1] %vm230_vm3, %v251_v39  ;;  %466 = vmatmul.mubr.msk.f32.vlgmr.msra.gmra.mrb[2].mxu0 %vm253_vm5, %v251_v39 }
 0x23d   :  { %v492_v40 = vpop.eup %491 }
 0x23e   :  { %v252_v41 = vmul.f32 %v492_v40, %v488_v32 }
 0x240   :  { %404 = vst.msk [vmem:[#allocation8 + $0x1] sm:$0x1] %vm230_vm3, %v252_v41  ;;  %471 = vmatmul.mubr.msk.f32.vlgmr.msra.gmra.mrb[2].mxu1 %vm253_vm5, %v252_v41 }
 0x241   :  { %548 = shalt.err (!%p545_p6)
}
 0x242   :  { %s549_s28 = scalar_lea.hbm %s705_s5, 32 }
 0x243   :  { %p550_p7 = scmp.ne.s32.totalorder %s705_s5, %s549_s28  ;;  %p553_p8 = scmp.lt.u32.totalorder %s549_s28, %s705_s5 }
 0x245   :  { %p555_p9 = pnand %p553_p8, %p550_p7 }
 0x247   :  { %558 = shalt.err (!%p555_p9)
}
 0x248   :  { %s597_s8 = smov 16   ;;  %s598_s9 = smov 1   ;;  %vm400_vm6 = vcmask 253952  }
 0x249   :  { %428 = dma.vmem_to_hbm [thread:$0]  %s423_s1, 32, %s705_s5, [#allocation9], %s597_s8, %s597_s8, %s598_s9  }
 0x24a   :  { %s599_s12 = smov [#allocation7]  }
 0x24b   :  { %s410_s13 = sshll.u32 %s599_s12, 4  ;;  %s411_s13 = int_to_ptr.vmem [resolvable:$true] %s410_s13 }
 0x24c   :  { %s559_s14 = scalar_lea.vmem %s411_s13, 32  ;;  %p564_p11 = scmp.lt.s32.totalorder %s411_s13, %s411_s13 }
 0x24d   :  { %p560_p10 = scmp.ne.s32.totalorder %s411_s13, %s559_s14  ;;  %p565_p12 = scmp.lt.s32.totalorder %s559_s14, %s559_s14 }
 0x24f   :  { %p566_p13 = por %p565_p12, %p564_p11 }
 0x251   :  { %p567_p0 = pnand %p566_p13, %p560_p10 }
 0x30f   :  { %v323_v42 = vpop.f32.mrb[2].mxu0 }
 0x310   :  { %401 = vst.msk [vmem:[#allocation7] sm:$0x1] %vm400_vm6, %v323_v42  ;;  %v467_v43 = vpop.f32.mrb[3].mxu0 }
 0x313   :  { %v396_v44 = vpop.f32.mrb[2].mxu1 }
 0x314   :  { %402 = vst.msk [vmem:[#allocation7 + $0x1] sm:$0x1] %vm400_vm6, %v396_v44  ;;  %v472_v45 = vpop.f32.mrb[3].mxu1 }
 0x315   :  { %570 = shalt.err (!%p567_p0)
}
 0x316   :  { %s571_s5 = scalar_lea.hbm %s704_s4, 32 }
 0x317   :  { %p572_p1 = scmp.ne.s32.totalorder %s704_s4, %s571_s5  ;;  %p575_p2 = scmp.lt.u32.totalorder %s571_s5, %s704_s4 }
 0x319   :  { %p577_p3 = pnand %p575_p2, %p572_p1 }
 0x31b   :  { %580 = shalt.err (!%p577_p3)
}
 0x31c   :  { %416 = dma.vmem_to_hbm [thread:$0]  %s411_s13, 32, %s704_s4, [#allocation4], %s597_s8, %s597_s8, %s598_s9  }
 0x31d   :  { %585 = dma.done.wait [#allocation4], 32  }
 0x31e   :  { %586 = vsyncadd [#allocation4], 4294967264 }
 0x31f   :  { %587 = dma.done.wait [#allocation9], 32  }
 0x320   :  { %588 = vsyncadd [#allocation9], 4294967264 }
 0x321   :  { %435 = vsyncpa [#allocation3], 1 }
 0x322   :  { %436 = vsyncpa [#allocation6], 1 }
 0x323   :  { %437 = vsyncpa [#allocation4], 1 }
 0x324   :  { %438 = vsyncpa [#allocation9], 1 }

</bundles_post_ra>
